<compile_context>
chip_gen: v6e
topology: v6e:2x2x1
jax: 0.10.0
libtpu: 0.0.40
codegen_flags: <defaults>
</compile_context>

<pallas_src>
import functools

import jax
import jax.numpy as jnp
from jax.experimental import pallas as pl
from jax.experimental.pallas import tpu as pltpu


def _round_up(x, m):
    return (x + m - 1) // m * m


def _patch_embed_kernel(x_ref, w_ref, b_ref, o_ref):
    # One M-tile of patches x full weight -> one M-tile of embeddings.
    # bf16 operands hit the MXU natively; accumulate in f32, bias add in f32.
    acc = jnp.dot(x_ref[...], w_ref[...], preferred_element_type=jnp.float32)
    o_ref[...] = (acc + b_ref[...]).astype(o_ref.dtype)


# Conservative tile-footprint budget, safe under the smallest scoped-VMEM
# default across generations (v5e: 16 MiB; v6e: 32/128; v7x: 32/64), with
# headroom for compiler-internal scratch.
_VMEM_BUDGET_BYTES = 12 << 20


def _choose_tm(M, K, E, in_itemsize, out_itemsize, tm_target):
    """Pick the M tile: >=4 grid steps when there is enough work, VMEM-safe."""
    if M <= 64:
        return M  # tiny problem: single full-array block, grid = (1,)

    tm_target = max(16, _round_up(int(tm_target), 16))
    # >= 4 grid steps => >= 2 steps per TensorCore on v7x (megacore sharding)
    # and real input/output double-buffering overlap on every generation.
    tm = min(tm_target, _round_up(pl.cdiv(M, 4), 16))
    tm = max(16, tm)

    # Clamp so 2x input tiles + 2x output tiles + resident weight/bias fit the
    # budget above (accounts for lane/sublane padding of the VMEM layout).
    lanes_k = _round_up(K, 128)
    lanes_e = _round_up(E, 128)
    fixed = _round_up(K, 16) * lanes_e * in_itemsize + 8 * lanes_e * 4  # weight + bias
    per_row = 2 * lanes_k * in_itemsize + 2 * lanes_e * out_itemsize
    tm_max = (_VMEM_BUDGET_BYTES - fixed) // per_row
    tm_max = max(16, (tm_max // 16) * 16)
    return min(tm, tm_max)


def _patch_embed_matmul(x_patches, weight, bias2d, *, out_dtype, tm_target):
    M, K = x_patches.shape
    _, E = weight.shape
    out_itemsize = jnp.dtype(out_dtype).itemsize

    tm = _choose_tm(M, K, E, x_patches.dtype.itemsize, out_itemsize, tm_target)
    grid = (pl.cdiv(M, tm),)

    cost = pl.CostEstimate(
        flops=2 * M * K * E,
        transcendentals=0,
        bytes_accessed=(
            M * K * x_patches.dtype.itemsize        # patch reads (bf16)
            + K * E * weight.dtype.itemsize         # resident weight (bf16)
            + E * 4                                 # bias
            + M * E * out_itemsize                  # output writeback
        ),
    )

    return pl.pallas_call(
        _patch_embed_kernel,
        out_shape=jax.ShapeDtypeStruct((M, E), out_dtype),
        grid_spec=pltpu.PrefetchScalarGridSpec(
            num_scalar_prefetch=0,
            grid=grid,
            in_specs=[
                pl.BlockSpec((tm, K), lambda i: (i, 0)),   # patch rows, full K
                pl.BlockSpec((K, E), lambda i: (0, 0)),    # full weight, resident
                pl.BlockSpec((1, E), lambda i: (0, 0)),    # bias row, resident
            ],
            out_specs=pl.BlockSpec((tm, E), lambda i: (i, 0)),
        ),
        compiler_params=pltpu.CompilerParams(
            dimension_semantics=("parallel",),
        ),
        cost_estimate=cost,
    )(x_patches, weight, bias2d)


def patch_embed_zero(x, conv_weight, conv_bias, *, patch_size, flatten=True,
                     compute_dtype=jnp.bfloat16, out_dtype=None, tm=None):
    """x: [B, C, H, W] (NCHW, matching PyTorch).

    Returns [B, Hp*Wp, E] if flatten else [B, E, Hp, Wp].
    out_dtype: dtype of the stored embeddings (default: x.dtype). Pass
      jnp.bfloat16 when the downstream transformer runs in bf16 — the kernel is
      writeback-bound, so this halves its HBM traffic.
    """
    B, C, H, W = x.shape
    p = patch_size
    assert H % p == 0 and W % p == 0
    Hp, Wp = H // p, W // p
    E = conv_weight.shape[0]
    K = C * p * p
    M = B * Hp * Wp
    if out_dtype is None:
        out_dtype = x.dtype
    if tm is None:
        tm = 1024 if M >= 8192 else 512

    # Cast first so the XLA-side patchify transpose writes compute_dtype bytes
    # (half the HBM traffic of an f32 pass).
    # TODO(synk): patchify could be fused into the Pallas operand via
    # allow_input_fusion; kept as glue since it is <3% of bytes for PixArt shapes.
    x = x.astype(compute_dtype)
    xp = x.reshape(B, C, Hp, p, Wp, p)
    xp = jnp.transpose(xp, (0, 2, 4, 1, 3, 5))
    x_patches = xp.reshape(M, K)

    # Conv weight [E, C, p, p] -> matmul weight [K, E]; bias stays f32.
    w_mat = conv_weight.reshape(E, K).T.astype(compute_dtype)
    bias2d = conv_bias.astype(jnp.float32).reshape(1, E)

    out = _patch_embed_matmul(x_patches, w_mat, bias2d,
                              out_dtype=out_dtype, tm_target=tm)

    out = out.reshape(B, Hp * Wp, E)
    if not flatten:
        out = out.reshape(B, Hp, Wp, E).transpose(0, 3, 1, 2)  # [B, E, Hp, Wp]
    # norm_layer=None -> Identity, nothing to do.
    return out


if __name__ == "__main__":
    # Small shapes consistent with the module.
    B, C, H, W = 2, 4, 16, 16
    patch_size = 8
    embed_dim = 32

    key = jax.random.PRNGKey(0)
    kx, kw, kb = jax.random.split(key, 3)
    x = jax.random.normal(kx, (B, C, H, W), dtype=jnp.float32)

    Hp, Wp = H // patch_size, W // patch_size
    fn = jax.jit(functools.partial(patch_embed_zero, patch_size=patch_size, flatten=True))

    # 1) Module as specified: zero_module zeros conv weight and bias -> output is 0.
    conv_weight = jnp.zeros((embed_dim, C, patch_size, patch_size), dtype=jnp.float32)
    conv_bias = jnp.zeros((embed_dim,), dtype=jnp.float32)
    y = jax.block_until_ready(fn(x, conv_weight, conv_bias))
    assert y.shape == (B, Hp * Wp, embed_dim), y.shape
    assert bool(jnp.all(y == 0.0))

    # 2) Sanity check of the conv-as-matmul path with non-zero random params
    #    against a pure-JAX reference (same bf16 input rounding, f32 accum).
    conv_weight_r = jax.random.normal(kw, (embed_dim, C, patch_size, patch_size), dtype=jnp.float32)
    conv_bias_r = jax.random.normal(kb, (embed_dim,), dtype=jnp.float32)
    y2 = jax.block_until_ready(fn(x, conv_weight_r, conv_bias_r))

    K = C * patch_size * patch_size
    xp = jnp.transpose(x.reshape(B, C, Hp, patch_size, Wp, patch_size), (0, 2, 4, 1, 3, 5))
    patches = xp.reshape(B * Hp * Wp, K).astype(jnp.bfloat16).astype(jnp.float32)
    w_ref = conv_weight_r.reshape(embed_dim, K).T.astype(jnp.bfloat16).astype(jnp.float32)
    ref = (patches @ w_ref + conv_bias_r[None, :]).reshape(B, Hp * Wp, embed_dim)
    assert bool(jnp.allclose(y2, ref, rtol=1e-4, atol=1e-4)), "mismatch vs reference"

    # 3) bf16-output knob (downstream transformer in bf16): shape/dtype and a
    #    loose numeric check against the f32 reference.
    fn_bf16 = jax.jit(functools.partial(patch_embed_zero, patch_size=patch_size,
                                        flatten=True, out_dtype=jnp.bfloat16))
    y3 = jax.block_until_ready(fn_bf16(x, conv_weight_r, conv_bias_r))
    assert y3.shape == (B, Hp * Wp, embed_dim) and y3.dtype == jnp.bfloat16
    assert bool(jnp.allclose(y3.astype(jnp.float32), ref, rtol=5e-2, atol=5e-1))

    print("KERNEL_OK")
</pallas_src>

<mosaic_0001>
module attributes {stable_mosaic.version = 11 : i64} {
  func.func @_patch_embed_kernel(%arg0: i32, %arg1: memref<8x256xbf16, #tpu.memory_space<vmem>>, %arg2: memref<256x32xbf16, #tpu.memory_space<vmem>>, %arg3: memref<1x32xf32, #tpu.memory_space<vmem>>, %arg4: memref<8x32xf32, #tpu.memory_space<vmem>>) attributes {dimension_semantics = [#tpu.dimension_semantics<parallel>], iteration_bounds = array<i64: 1>, scalar_prefetch = 0 : i64, scratch_operands = 0 : i64, tpu.core_type = #tpu.core_type<tc>, window_params = [{transform_indices = @transform_0, window_bounds = array<i64: 8, 256>}, {pipeline_mode = #tpu.pipeline_mode<synchronous>, transform_indices = @transform_1, window_bounds = array<i64: 256, 32>}, {pipeline_mode = #tpu.pipeline_mode<synchronous>, transform_indices = @transform_2, window_bounds = array<i64: 1, 32>}, {transform_indices = @transform_3, window_bounds = array<i64: 8, 32>}]} {
    %c0 = arith.constant 0 : index
    %c0_0 = arith.constant 0 : index
    %0 = vector.load %arg1[%c0, %c0_0] : memref<8x256xbf16, #tpu.memory_space<vmem>>, vector<8x256xbf16>
    %c0_1 = arith.constant 0 : index
    %c0_2 = arith.constant 0 : index
    %1 = vector.load %arg2[%c0_1, %c0_2] : memref<256x32xbf16, #tpu.memory_space<vmem>>, vector<256x32xbf16>
    %cst = arith.constant dense<0.000000e+00> : vector<8x32xf32>
    %2 = tpu.matmul %0, %1, %cst {dimension_numbers = #tpu.dot_dimension_numbers<[1], [0], [0], [1], [0, 0, 1, 1], [], []>} : vector<8x256xbf16>, vector<256x32xbf16>, vector<8x32xf32> -> vector<8x32xf32>
    %c0_3 = arith.constant 0 : index
    %c0_4 = arith.constant 0 : index
    %3 = vector.load %arg3[%c0_3, %c0_4] : memref<1x32xf32, #tpu.memory_space<vmem>>, vector<1x32xf32>
    %4 = vector.broadcast %3 : vector<1x32xf32> to vector<8x32xf32>
    %5 = arith.addf %2, %4 : vector<8x32xf32>
    %c0_5 = arith.constant 0 : index
    %c0_6 = arith.constant 0 : index
    %6 = vector.load %arg4[%c0_5, %c0_6] : memref<8x32xf32, #tpu.memory_space<vmem>>, vector<8x32xf32>
    tpu.vector_store %arg4[%c0_5, %c0_6], %5 {strides = array<i32>} : memref<8x32xf32, #tpu.memory_space<vmem>>, vector<8x32xf32>,
    return
  }
  func.func @transform_0(%arg0: i32) -> (i32, i32) {
    %c0_i32 = arith.constant 0 : i32
    %c0_i32_0 = arith.constant 0 : i32
    return %arg0, %c0_i32 : i32, i32
  }
  func.func @transform_1(%arg0: i32) -> (i32, i32) {
    %c0_i32 = arith.constant 0 : i32
    %c0_i32_0 = arith.constant 0 : i32
    %c0_i32_1 = arith.constant 0 : i32
    return %c0_i32, %c0_i32_0 : i32, i32
  }
  func.func @transform_2(%arg0: i32) -> (i32, i32) {
    %c0_i32 = arith.constant 0 : i32
    %c0_i32_0 = arith.constant 0 : i32
    %c0_i32_1 = arith.constant 0 : i32
    return %c0_i32, %c0_i32_0 : i32, i32
  }
  func.func @transform_3(%arg0: i32) -> (i32, i32) {
    %c0_i32 = arith.constant 0 : i32
    %c0_i32_0 = arith.constant 0 : i32
    return %arg0, %c0_i32 : i32, i32
  }
}

</mosaic_0001>

<bundles_post_ra>
// kernel: patch_embed_zero.1
= control target key start
LH: loop header
LB: loop body
LE: loop exit
PB: predicated region body
PF: predicated region fallthrough
CT: control target
= control target key end

     0   :  { %s375_s0 = inlined_call_operand.vmem [shape: bf16[8,256], index: 0, kind: input, shape index: {}]   ;;  %s376_s1 = inlined_call_operand.vmem [shape: bf16[256,32], index: 1, kind: input, shape index: {}]   ;;  %s377_s2 = inlined_call_operand.vmem [shape: f32[1,32], index: 2, kind: input, shape index: {}]   ;;  %s378_s3 = inlined_call_operand.hbm [shape: f32[8,32], index: 3, kind: output, shape index: {}]  }
   0x1   :  { %v257_v0 = vld [vmem:[%s376_s1 + $0x78] sm:$0xff]   ;;  %v259_v2 = vld [vmem:[%s376_s1 + $0x70] sm:$0xff]   ;;  %v261_v4 = vld [vmem:[%s376_s1 + $0x68] sm:$0xff]  }
   0x2   :  { %v258_v1 = vld [vmem:[%s376_s1 + $0x38] sm:$0xff]   ;;  %234 = vmatprep.subr.bf16.mxu0 %v257_v0  ;;  %v260_v3 = vld [vmem:[%s376_s1 + $0x30] sm:$0xff]   ;;  %v262_v5 = vld [vmem:[%s376_s1 + $0x28] sm:$0xff]  }
   0x3   :  { %235 = vmatpush3.bf16.msra.mxu0 %v258_v1  ;;  %v263_v6 = vld [vmem:[%s376_s1 + $0x60] sm:$0xff]   ;;  %v265_v8 = vld [vmem:[%s376_s1 + $0x58] sm:$0xff]   ;;  %v267_v10 = vld [vmem:[%s376_s1 + $0x50] sm:$0xff]  }
   0x4   :  { %236 = vmatprep.subr.bf16.mxu0 %v259_v2  ;;  %v264_v7 = vld [vmem:[%s376_s1 + $0x20] sm:$0xff]   ;;  %v266_v9 = vld [vmem:[%s376_s1 + $0x18] sm:$0xff]  }
   0x5   :  { %v16_v11 = vld [vmem:[%s375_s0] sm:$0xff] }
   0x7   :  { %237 = vmatpush3.bf16.msra.mxu0 %v260_v3 }
   0x8   :  { %238 = vmatprep.subr.bf16.mxu0 %v261_v4 }
   0xb   :  { %239 = vmatpush3.bf16.msra.mxu0 %v262_v5 }
   0xc   :  { %240 = vmatprep.subr.bf16.mxu0 %v263_v6 }
   0xf   :  { %241 = vmatpush3.bf16.msra.mxu0 %v264_v7 }
  0x10   :  { %242 = vmatprep.subr.bf16.mxu0 %v265_v8 }
  0x11   :  { %8 = vsyncpa [#allocation3], 0  ;;  %v217_v12 = vcombine.high %v16_v11, %v16_v11  ;;  %v268_v13 = vld [vmem:[%s376_s1 + $0x10] sm:$0xff]   ;;  %v269_v14 = vld [vmem:[%s376_s1 + $0x48] sm:$0xff]   ;;  %v216_v18 = vcombine.low %v16_v11, %v16_v11  ;;  %s297_s20 = smov [#allocation2]   ;;  %vm199_vm0 = vcmask 261120  }
  0x12   :  { %v270_v15 = vld [vmem:[%s376_s1 + $0x8] sm:$0xff]   ;;  %v271_v16 = vld [vmem:[%s376_s1 + $0x40] sm:$0xff]   ;;  %s207_s21 = sshll.u32 %s297_s20, 4  ;;  %s208_s21 = int_to_ptr.vmem [resolvable:$true] %s207_s21 }
  0x13   :  { %243 = vmatpush3.bf16.msra.mxu0 %v266_v9  ;;  %191 = vmatprep.mubr.bf16.mxu0 %v217_v12  ;;  %v272_v17 = vld [vmem:[%s376_s1] sm:$0xff]   ;;  %s275_s1 = scalar_lea.vmem %s208_s21, 128  ;;  %p280_p1 = scmp.lt.s32.totalorder %s208_s21, %s208_s21 }
  0x14   :  { %244 = vmatprep.subr.bf16.mxu0 %v267_v10  ;;  %v215_v20 = vld [vmem:[%s377_s2] ss:$0 sm:$0xff]  ;;  %p276_p0 = scmp.ne.s32.totalorder %s208_s21, %s275_s1  ;;  %p281_p2 = scmp.lt.s32.totalorder %s275_s1, %s275_s1 }
  0x16   :  { %p282_p3 = por %p281_p2, %p280_p1 }
  0x17   :  { %245 = vmatpush3.bf16.msra.mxu0 %v268_v13 }
  0x18   :  { %246 = vmatprep.subr.bf16.mxu0 %v269_v14  ;;  %p283_p4 = pnand %p282_p3, %p276_p0 }
  0x1b   :  { %247 = vmatpush3.bf16.msra.mxu0 %v270_v15 }
  0x1c   :  { %248 = vmatprep.subr.bf16.mxu0 %v271_v16 }
  0x1f   :  { %249 = vmatpush3.bf16.msra.mxu0 %v272_v17 }
  0x22   :  { %192 = vmatmul.mubr.bf16.vlgmr.msra.gmra.mxu0 %v216_v18 }
  0xe2   :  { %v250_v19 = vpop.f32.mrf.mxu0 }
  0xe4   :  { %v251_v21 = vpop.f32.mrf.mxu0 }
  0xe5   :  { %v252_v22 = vadd.f32 %v251_v21, %v250_v19 }
  0xe6   :  { %v253_v23 = vpop.f32.mrf.mxu0 }
  0xe7   :  { %v194_v24 = vadd.f32 %v252_v22, %v215_v20 }
  0xe8   :  { %v254_v25 = vpop.f32.mrf.mxu0 }
  0xe9   :  { %200 = vst.msk [vmem:[#allocation2] sm:$0xff] %vm199_vm0, %v194_v24 }
  0xea   :  { %286 = shalt.err (!%p283_p4)
}
  0xeb   :  { %210 = dma.vmem_to_hbm [thread:$0]  %s208_s21, 128, %s378_s3, [#allocation3]  }
  0xec   :  { %295 = dma.done.wait [#allocation3], 128  }
  0xed   :  { %296 = vsyncadd [#allocation3], 4294967168 }
  0xee   :  { %214 = vsyncpa [#allocation3], 1 }

</bundles_post_ra>
